<compile_context>
chip_gen: v6e
topology: v6e:2x2x1
jax: 0.10.0
libtpu: 0.0.40
codegen_flags: <defaults>
</compile_context>

<pallas_src>
import jax
import jax.numpy as jnp
from jax.experimental import pallas as pl
from jax.experimental.pallas import tpu as pltpu


# --------------------------------------------------------------------------- #
# Kernel
# --------------------------------------------------------------------------- #
def eiie_kernel(obs_ref, last_ref, scal_ref, w1_ref, b1_ref, w2_ref, b2_ref,
                w3_ref, bf_ref, out_ref, h_ref, o2_ref):
    # obs_ref : (TB, F*N*T)            VMEM   batch rows, native (feat,stock,time) lanes
    # last_ref: (TB, N+1)              VMEM   last_action with cash column zeroed
    # scal_ref: (1,)                   SMEM   final-conv weight on last_stocks
    # w1_ref  : (F*N*T, N*MID*NSIZE)   VMEM   block-diagonal Toeplitz conv1 weights
    # b1_ref  : (1, N*MID*NSIZE)       VMEM
    # w2_ref  : (N*MID*NSIZE, N*CF)    VMEM   block-diagonal conv2 weights
    # b2_ref  : (1, N*CF)              VMEM
    # w3_ref  : (N*CF, N+1)            VMEM   col 0 = zeros (cash logit), cols 1..N block-diag
    # bf_ref  : (1, N+1)               VMEM   [0, b3, ..., b3]
    # out_ref : (TB, N+1)              VMEM   softmax output (cash first)
    # h_ref   : (TB, N*MID*NSIZE)      VMEM scratch (conv1 activations)
    # o2_ref  : (TB, N*CF)             VMEM scratch (conv2 activations)

    # ---- conv1 (1 x K) + ReLU : one block-diagonal Toeplitz MXU matmul ----
    h_ref[...] = jnp.maximum(
        jnp.dot(obs_ref[...], w1_ref[...], preferred_element_type=jnp.float32)
        + b1_ref[...], 0.0)

    # ---- conv2 (1 x NSIZE) + ReLU : one block-diagonal MXU matmul ----
    o2_ref[...] = jnp.maximum(
        jnp.dot(h_ref[...], w2_ref[...], preferred_element_type=jnp.float32)
        + b2_ref[...], 0.0)

    # ---- final 1x1 conv -> logits; lane 0 stays exactly 0 (cash logit) ----
    logits = (jnp.dot(o2_ref[...], w3_ref[...], preferred_element_type=jnp.float32)
              + last_ref[...] * scal_ref[0] + bf_ref[...])          # (TB, N+1)

    # ---- fused softmax over [cash, stocks...] : single lane-dense store ----
    m = jnp.max(logits, axis=-1, keepdims=True)
    e = jnp.exp(logits - m)
    out_ref[...] = e * pl.reciprocal(jnp.sum(e, axis=-1, keepdims=True),
                                     approx=False)


# --------------------------------------------------------------------------- #
# Parameter packing (done ONCE per parameter set, outside the jitted forward)
# --------------------------------------------------------------------------- #
def eiie_pack_params(w1, b1, w2, b2, w3, b3, n_assets, time_window):
    """Repack PyTorch-shaped conv tensors into kernel-friendly matrices."""
    MID, F, _, K = w1.shape
    CF = w2.shape[0]
    N, T = n_assets, time_window
    NSIZE = T - K + 1
    f32 = jnp.float32
    eye_n = jnp.eye(N, dtype=f32)

    # conv1 -> block-diagonal Toeplitz.  Rows indexed (feature, stock, time) to
    # match the flattened native observation layout; cols indexed (stock, mid, s).
    t_idx = jnp.arange(T)[:, None]
    s_idx = jnp.arange(NSIZE)[None, :]
    d = t_idx - s_idx                                    # (T, NSIZE), tap index t - s
    valid = (d >= 0) & (d < K)
    dcl = jnp.clip(d, 0, K - 1)
    w1_fkm = jnp.transpose(w1[:, :, 0, :].astype(f32), (1, 2, 0))      # (F, K, MID)
    blk = jnp.where(valid[None, :, :, None], w1_fkm[:, dcl, :], 0.0)   # (F, T, NSIZE, MID)
    blk = jnp.transpose(blk, (0, 1, 3, 2))                             # (F, T, MID, NSIZE)
    w1_toep = jnp.einsum("ftms,nq->fntqms", blk, eye_n).reshape(
        F * N * T, N * MID * NSIZE)                                    # (F*N*T, N*MID*NSIZE)
    b1_row = jnp.tile(jnp.repeat(b1.astype(f32), NSIZE), N).reshape(1, N * MID * NSIZE)

    # conv2 -> block-diagonal matrix (accepted O(N^2) kron; fine for small N).
    w2_mat = jnp.transpose(w2[:, :, 0, :].astype(f32), (1, 2, 0)).reshape(MID * NSIZE, CF)
    w2_bd = jnp.kron(eye_n, w2_mat)                                    # (N*MID*NSIZE, N*CF)
    b2_row = jnp.tile(b2.astype(f32), N).reshape(1, N * CF)

    # final 1x1 conv; column 0 reserved for the (zero) cash logit.
    w3_vec = w3[0, 1:, 0, 0].astype(f32).reshape(CF, 1)
    w3_bd = jnp.concatenate([jnp.zeros((N * CF, 1), f32),
                             jnp.kron(eye_n, w3_vec)], axis=1)         # (N*CF, N+1)
    bias_row = jnp.concatenate([jnp.zeros((1,), f32),
                                jnp.full((N,), b3[0], f32)]).reshape(1, N + 1)
    scal = w3[0, 0, 0, 0].astype(f32).reshape(1)                       # last-stocks weight

    return (w1_toep, b1_row, w2_bd, b2_row, w3_bd, bias_row, scal)


# --------------------------------------------------------------------------- #
# Forward
# --------------------------------------------------------------------------- #
_MAX_BATCH_TILE = 288   # -> B=520 gives 2 tiles of 264 rows (even split on v7x's 2 TCs)


@jax.jit
def eiie_forward(observation, last_action, params):
    """Pallas-backed EIIE forward.  `params` from eiie_pack_params."""
    w1_toep, b1_row, w2_bd, b2_row, w3_bd, bias_row, scal = params
    B = observation.shape[0]
    N = last_action.shape[1] - 1
    FNT = w1_toep.shape[0]        # F*N*T
    HWID = w1_toep.shape[1]       # N*MID*NSIZE
    CWID = w2_bd.shape[1]         # N*CF

    # Free reshape (no transpose copy): native (B, F, N, T) -> (B, F*N*T).
    obs_rows = observation.astype(jnp.float32).reshape(B, FNT)
    # last_action with the cash column zeroed (it is replaced by a zero bias).
    mask = jnp.concatenate([jnp.zeros((1,), jnp.float32),
                            jnp.ones((N,), jnp.float32)])
    last_in = last_action.astype(jnp.float32) * mask[None, :]

    # ---- batch tiling: few large tiles, even count when >1, multiple of 8 ----
    n_tiles = -(-B // _MAX_BATCH_TILE)
    if n_tiles > 1 and n_tiles % 2:
        n_tiles += 1
    TB = -(-B // n_tiles)
    TB = -(-TB // 8) * 8
    Bp = TB * n_tiles
    if Bp != B:
        obs_rows = jnp.pad(obs_rows, ((0, Bp - B), (0, 0)))
        last_in = jnp.pad(last_in, ((0, Bp - B), (0, 0)))

    out = pl.pallas_call(
        eiie_kernel,
        out_shape=jax.ShapeDtypeStruct((Bp, N + 1), jnp.float32),
        grid=(n_tiles,),
        in_specs=[
            pl.BlockSpec((TB, FNT), lambda i: (i, 0)),               # observation tile
            pl.BlockSpec((TB, N + 1), lambda i: (i, 0)),             # last_action tile
            pl.BlockSpec(memory_space=pltpu.MemorySpace.SMEM),       # scal
            pl.BlockSpec((FNT, HWID), lambda i: (0, 0)),             # W1 Toeplitz (DMA once)
            pl.BlockSpec((1, HWID), lambda i: (0, 0)),               # b1 row
            pl.BlockSpec((HWID, CWID), lambda i: (0, 0)),            # W2 block-diag
            pl.BlockSpec((1, CWID), lambda i: (0, 0)),               # b2 row
            pl.BlockSpec((CWID, N + 1), lambda i: (0, 0)),           # W3 (+ cash column)
            pl.BlockSpec((1, N + 1), lambda i: (0, 0)),              # final bias row
        ],
        out_specs=pl.BlockSpec((TB, N + 1), lambda i: (i, 0)),
        scratch_shapes=[pltpu.VMEM((TB, HWID), jnp.float32),
                        pltpu.VMEM((TB, CWID), jnp.float32)],
        compiler_params=pltpu.CompilerParams(
            dimension_semantics=("parallel",),          # v7x: shard batch over 2 TCs
            vmem_limit_bytes=32 * 1024 * 1024),         # explicit (v5e default is 16 MiB)
    )(obs_rows, last_in, scal, w1_toep, b1_row, w2_bd, b2_row, w3_bd, bias_row)

    return out[:B]                                                   # (B, N+1)


# --------------------------------------------------------------------------- #
# Pure-JAX reference (verification)
# --------------------------------------------------------------------------- #
def eiie_reference(observation, last_action, w1, b1, w2, b2, w3, b3):
    B, F, N, T = observation.shape
    MID, _, _, K = w1.shape
    CF = w2.shape[0]
    NSIZE = T - K + 1

    # conv1 (kernel (1, K)) + ReLU
    h = []
    for co in range(MID):
        acc = jnp.zeros((B, N, NSIZE), jnp.float32)
        for ci in range(F):
            for dt in range(K):
                acc = acc + observation[:, ci, :, dt:dt + NSIZE] * w1[co, ci, 0, dt]
        h.append(jax.nn.relu(acc + b1[co]))
    h = jnp.stack(h, axis=1)                                         # (B, MID, N, NSIZE)

    # conv2 (kernel (1, NSIZE)) + ReLU -> (B, CF, N)
    out2 = jnp.einsum("bmns,cms->bcn", h, w2[:, :, 0, :],
                      precision=jax.lax.Precision.HIGHEST) + b2[None, :, None]
    out2 = jax.nn.relu(out2)

    last_stocks = last_action[:, 1:]                                 # (B, N)
    logits = (w3[0, 0, 0, 0] * last_stocks
              + jnp.einsum("bcn,c->bn", out2, w3[0, 1:, 0, 0],
                           precision=jax.lax.Precision.HIGHEST)
              + b3[0])
    full = jnp.concatenate([jnp.zeros((B, 1), jnp.float32), logits], axis=1)
    return jax.nn.softmax(full, axis=-1)


# --------------------------------------------------------------------------- #
# Test driver
# --------------------------------------------------------------------------- #
def _run_case(B, F, K, MID, CF, T, N):
    NSIZE = T - K + 1
    key = jax.random.PRNGKey(0)
    ks = jax.random.split(key, 8)

    # Deterministic synthetic parameters (PyTorch conv weight shapes).
    w1 = jax.random.normal(ks[0], (MID, F, 1, K), jnp.float32) * 0.3
    b1 = jax.random.normal(ks[1], (MID,), jnp.float32) * 0.1
    w2 = jax.random.normal(ks[2], (CF, MID, 1, NSIZE), jnp.float32) * 0.1
    b2 = jax.random.normal(ks[3], (CF,), jnp.float32) * 0.1
    w3 = jax.random.normal(ks[4], (1, CF + 1, 1, 1), jnp.float32) * 0.1
    b3 = jax.random.normal(ks[5], (1,), jnp.float32) * 0.1

    # Deterministic inputs.
    observation = jax.random.normal(ks[6], (B, F, N, T), jnp.float32)
    last_action = jax.nn.softmax(
        jax.random.normal(ks[7], (B, N + 1), jnp.float32), axis=-1)

    params = eiie_pack_params(w1, b1, w2, b2, w3, b3, n_assets=N, time_window=T)
    out = eiie_forward(observation, last_action, params)
    out = jax.block_until_ready(out)
    ref = eiie_reference(observation, last_action, w1, b1, w2, b2, w3, b3)

    assert out.shape == (B, N + 1)
    assert jnp.allclose(jnp.sum(out, axis=-1), 1.0, atol=1e-5)
    err = jnp.max(jnp.abs(out - ref))
    assert jnp.allclose(out, ref, atol=1e-5, rtol=1e-5), f"max abs err = {err}"


if __name__ == "__main__":
    # Small, module-consistent shapes (single grid step, whole batch per block).
    _run_case(B=2, F=3, K=3, MID=2, CF=20, T=16, N=8)
    # Module-default time window; batch > tile so the multi-step "parallel"
    # batch grid, right-sized tiling (520 -> 2 x 264) and padding are exercised.
    _run_case(B=520, F=3, K=3, MID=2, CF=20, T=50, N=11)
    print("KERNEL_OK")
</pallas_src>

<mosaic_0001>
module attributes {stable_mosaic.version = 11 : i64} {
  func.func @eiie_kernel(%arg0: i32, %arg1: memref<8x384xf32, #tpu.memory_space<vmem>>, %arg2: memref<8x9xf32, #tpu.memory_space<vmem>>, %arg3: memref<1xf32, #tpu.memory_space<smem>>, %arg4: memref<384x224xf32, #tpu.memory_space<vmem>>, %arg5: memref<1x224xf32, #tpu.memory_space<vmem>>, %arg6: memref<224x160xf32, #tpu.memory_space<vmem>>, %arg7: memref<1x160xf32, #tpu.memory_space<vmem>>, %arg8: memref<160x9xf32, #tpu.memory_space<vmem>>, %arg9: memref<1x9xf32, #tpu.memory_space<vmem>>, %arg10: memref<8x9xf32, #tpu.memory_space<vmem>>, %arg11: memref<8x224xf32, #tpu.memory_space<vmem>>, %arg12: memref<8x160xf32, #tpu.memory_space<vmem>>) attributes {dimension_semantics = [#tpu.dimension_semantics<parallel>], iteration_bounds = array<i64: 1>, scalar_prefetch = 0 : i64, scratch_operands = 2 : i64, tpu.core_type = #tpu.core_type<tc>, window_params = [{transform_indices = @transform_0, window_bounds = array<i64: 8, 384>}, {transform_indices = @transform_1, window_bounds = array<i64: 8, 9>}, {transform_indices = @transform_2, window_bounds = array<i64: 1>}, {pipeline_mode = #tpu.pipeline_mode<synchronous>, transform_indices = @transform_3, window_bounds = array<i64: 384, 224>}, {pipeline_mode = #tpu.pipeline_mode<synchronous>, transform_indices = @transform_4, window_bounds = array<i64: 1, 224>}, {pipeline_mode = #tpu.pipeline_mode<synchronous>, transform_indices = @transform_5, window_bounds = array<i64: 224, 160>}, {pipeline_mode = #tpu.pipeline_mode<synchronous>, transform_indices = @transform_6, window_bounds = array<i64: 1, 160>}, {pipeline_mode = #tpu.pipeline_mode<synchronous>, transform_indices = @transform_7, window_bounds = array<i64: 160, 9>}, {pipeline_mode = #tpu.pipeline_mode<synchronous>, transform_indices = @transform_8, window_bounds = array<i64: 1, 9>}, {transform_indices = @transform_9, window_bounds = array<i64: 8, 9>}]} {
    %c0 = arith.constant 0 : index
    %c0_0 = arith.constant 0 : index
    %0 = vector.load %arg1[%c0, %c0_0] : memref<8x384xf32, #tpu.memory_space<vmem>>, vector<8x384xf32>
    %c0_1 = arith.constant 0 : index
    %c0_2 = arith.constant 0 : index
    %1 = vector.load %arg4[%c0_1, %c0_2] : memref<384x224xf32, #tpu.memory_space<vmem>>, vector<384x224xf32>
    %cst = arith.constant dense<0.000000e+00> : vector<8x224xf32>
    %2 = tpu.matmul %0, %1, %cst {dimension_numbers = #tpu.dot_dimension_numbers<[1], [0], [0], [1], [0, 0, 1, 1], [], []>} : vector<8x384xf32>, vector<384x224xf32>, vector<8x224xf32> -> vector<8x224xf32>
    %c0_3 = arith.constant 0 : index
    %c0_4 = arith.constant 0 : index
    %3 = vector.load %arg5[%c0_3, %c0_4] : memref<1x224xf32, #tpu.memory_space<vmem>>, vector<1x224xf32>
    %4 = vector.broadcast %3 : vector<1x224xf32> to vector<8x224xf32>
    %5 = arith.addf %2, %4 : vector<8x224xf32>
    %cst_5 = arith.constant 0.000000e+00 : f32
    %6 = vector.broadcast %cst_5 : f32 to vector<8x224xf32>
    %7 = arith.maximumf %5, %6 : vector<8x224xf32>
    %c0_6 = arith.constant 0 : index
    %c0_7 = arith.constant 0 : index
    %8 = vector.load %arg11[%c0_6, %c0_7] : memref<8x224xf32, #tpu.memory_space<vmem>>, vector<8x224xf32>
    tpu.vector_store %arg11[%c0_6, %c0_7], %7 {strides = array<i32>} : memref<8x224xf32, #tpu.memory_space<vmem>>, vector<8x224xf32>,
    %c0_8 = arith.constant 0 : index
    %c0_9 = arith.constant 0 : index
    %9 = vector.load %arg11[%c0_8, %c0_9] : memref<8x224xf32, #tpu.memory_space<vmem>>, vector<8x224xf32>
    %c0_10 = arith.constant 0 : index
    %c0_11 = arith.constant 0 : index
    %10 = vector.load %arg6[%c0_10, %c0_11] : memref<224x160xf32, #tpu.memory_space<vmem>>, vector<224x160xf32>
    %cst_12 = arith.constant dense<0.000000e+00> : vector<8x160xf32>
    %11 = tpu.matmul %9, %10, %cst_12 {dimension_numbers = #tpu.dot_dimension_numbers<[1], [0], [0], [1], [0, 0, 1, 1], [], []>} : vector<8x224xf32>, vector<224x160xf32>, vector<8x160xf32> -> vector<8x160xf32>
    %c0_13 = arith.constant 0 : index
    %c0_14 = arith.constant 0 : index
    %12 = vector.load %arg7[%c0_13, %c0_14] : memref<1x160xf32, #tpu.memory_space<vmem>>, vector<1x160xf32>
    %13 = vector.broadcast %12 : vector<1x160xf32> to vector<8x160xf32>
    %14 = arith.addf %11, %13 : vector<8x160xf32>
    %cst_15 = arith.constant 0.000000e+00 : f32
    %15 = vector.broadcast %cst_15 : f32 to vector<8x160xf32>
    %16 = arith.maximumf %14, %15 : vector<8x160xf32>
    %c0_16 = arith.constant 0 : index
    %c0_17 = arith.constant 0 : index
    %17 = vector.load %arg12[%c0_16, %c0_17] : memref<8x160xf32, #tpu.memory_space<vmem>>, vector<8x160xf32>
    tpu.vector_store %arg12[%c0_16, %c0_17], %16 {strides = array<i32>} : memref<8x160xf32, #tpu.memory_space<vmem>>, vector<8x160xf32>,
    %c0_18 = arith.constant 0 : index
    %c0_19 = arith.constant 0 : index
    %18 = vector.load %arg12[%c0_18, %c0_19] : memref<8x160xf32, #tpu.memory_space<vmem>>, vector<8x160xf32>
    %c0_20 = arith.constant 0 : index
    %c0_21 = arith.constant 0 : index
    %19 = vector.load %arg8[%c0_20, %c0_21] : memref<160x9xf32, #tpu.memory_space<vmem>>, vector<160x9xf32>
    %cst_22 = arith.constant dense<0.000000e+00> : vector<8x9xf32>
    %20 = tpu.matmul %18, %19, %cst_22 {dimension_numbers = #tpu.dot_dimension_numbers<[1], [0], [0], [1], [0, 0, 1, 1], [], []>} : vector<8x160xf32>, vector<160x9xf32>, vector<8x9xf32> -> vector<8x9xf32>
    %c0_23 = arith.constant 0 : index
    %c0_24 = arith.constant 0 : index
    %21 = vector.load %arg2[%c0_23, %c0_24] : memref<8x9xf32, #tpu.memory_space<vmem>>, vector<8x9xf32>
    %c0_25 = arith.constant 0 : index
    %22 = memref.load %arg3[%c0_25] : memref<1xf32, #tpu.memory_space<smem>>
    %23 = vector.broadcast %22 : f32 to vector<8x9xf32>
    %24 = arith.mulf %21, %23 : vector<8x9xf32>
    %25 = arith.addf %20, %24 : vector<8x9xf32>
    %c0_26 = arith.constant 0 : index
    %c0_27 = arith.constant 0 : index
    %26 = vector.load %arg9[%c0_26, %c0_27] : memref<1x9xf32, #tpu.memory_space<vmem>>, vector<1x9xf32>
    %27 = vector.broadcast %26 : vector<1x9xf32> to vector<8x9xf32>
    %28 = arith.addf %25, %27 : vector<8x9xf32>
    %cst_28 = arith.constant dense<0xFF800000> : vector<8xf32>
    %29 = vector.multi_reduction <maximumf>, %28, %cst_28 [1] : vector<8x9xf32> to vector<8xf32>
    %30 = vector.shape_cast %29 : vector<8xf32> to vector<8x1xf32>
    %31 = vector.broadcast %30 : vector<8x1xf32> to vector<8x9xf32>
    %32 = arith.subf %28, %31 : vector<8x9xf32>
    %33 = math.exp %32 : vector<8x9xf32>
    %cst_29 = arith.constant dense<0.000000e+00> : vector<8xf32>
    %34 = vector.multi_reduction <add>, %33, %cst_29 [1] : vector<8x9xf32> to vector<8xf32>
    %35 = vector.shape_cast %34 : vector<8xf32> to vector<8x1xf32>
    %36 = tpu.reciprocal %35 : vector<8x1xf32> -> vector<8x1xf32>
    %37 = vector.broadcast %36 : vector<8x1xf32> to vector<8x9xf32>
    %38 = arith.mulf %33, %37 : vector<8x9xf32>
    %c0_30 = arith.constant 0 : index
    %c0_31 = arith.constant 0 : index
    %39 = vector.load %arg10[%c0_30, %c0_31] : memref<8x9xf32, #tpu.memory_space<vmem>>, vector<8x9xf32>
    tpu.vector_store %arg10[%c0_30, %c0_31], %38 {strides = array<i32>} : memref<8x9xf32, #tpu.memory_space<vmem>>, vector<8x9xf32>,
    return
  }
  func.func @transform_0(%arg0: i32) -> (i32, i32) {
    %c0_i32 = arith.constant 0 : i32
    %c0_i32_0 = arith.constant 0 : i32
    return %arg0, %c0_i32 : i32, i32
  }
  func.func @transform_1(%arg0: i32) -> (i32, i32) {
    %c0_i32 = arith.constant 0 : i32
    %c0_i32_0 = arith.constant 0 : i32
    return %arg0, %c0_i32 : i32, i32
  }
  func.func @transform_2(%arg0: i32) -> i32 {
    %c0_i32 = arith.constant 0 : i32
    %c0_i32_0 = arith.constant 0 : i32
    return %c0_i32 : i32
  }
  func.func @transform_3(%arg0: i32) -> (i32, i32) {
    %c0_i32 = arith.constant 0 : i32
    %c0_i32_0 = arith.constant 0 : i32
    %c0_i32_1 = arith.constant 0 : i32
    return %c0_i32, %c0_i32_0 : i32, i32
  }
  func.func @transform_4(%arg0: i32) -> (i32, i32) {
    %c0_i32 = arith.constant 0 : i32
    %c0_i32_0 = arith.constant 0 : i32
    %c0_i32_1 = arith.constant 0 : i32
    return %c0_i32, %c0_i32_0 : i32, i32
  }
  func.func @transform_5(%arg0: i32) -> (i32, i32) {
    %c0_i32 = arith.constant 0 : i32
    %c0_i32_0 = arith.constant 0 : i32
    %c0_i32_1 = arith.constant 0 : i32
    return %c0_i32, %c0_i32_0 : i32, i32
  }
  func.func @transform_6(%arg0: i32) -> (i32, i32) {
    %c0_i32 = arith.constant 0 : i32
    %c0_i32_0 = arith.constant 0 : i32
    %c0_i32_1 = arith.constant 0 : i32
    return %c0_i32, %c0_i32_0 : i32, i32
  }
  func.func @transform_7(%arg0: i32) -> (i32, i32) {
    %c0_i32 = arith.constant 0 : i32
    %c0_i32_0 = arith.constant 0 : i32
    %c0_i32_1 = arith.constant 0 : i32
    return %c0_i32, %c0_i32_0 : i32, i32
  }
  func.func @transform_8(%arg0: i32) -> (i32, i32) {
    %c0_i32 = arith.constant 0 : i32
    %c0_i32_0 = arith.constant 0 : i32
    %c0_i32_1 = arith.constant 0 : i32
    return %c0_i32, %c0_i32_0 : i32, i32
  }
  func.func @transform_9(%arg0: i32) -> (i32, i32) {
    %c0_i32 = arith.constant 0 : i32
    %c0_i32_0 = arith.constant 0 : i32
    return %arg0, %c0_i32 : i32, i32
  }
}

</mosaic_0001>

<bundles_post_ra>
// kernel: eiie_forward.1
= control target key start
LH: loop header
LB: loop body
LE: loop exit
PB: predicated region body
PF: predicated region fallthrough
CT: control target
= control target key end

     0   :  { %v572_v3 = vmov 0.0   ;;  %vm289_vm0 = vcmask 785408   ;;  %vm438_vm1 = vcmask 261120   ;;  %vm547_vm2 = vcmask 72704   ;;  %s1190_s3 = inlined_call_operand.vmem [shape: f32[384,224], index: 3, kind: input, shape index: {}]   ;;  %s1191_s0 = inlined_call_operand.vmem [shape: f32[8,384], index: 0, kind: input, shape index: {}]   ;;  %s1192_s5 = inlined_call_operand.vmem [shape: f32[224,160], index: 5, kind: input, shape index: {}]   ;;  %s1193_s7 = inlined_call_operand.vmem [shape: f32[160,9], index: 7, kind: input, shape index: {}]   ;;  %s1194_s4 = inlined_call_operand.vmem [shape: f32[1,224], index: 4, kind: input, shape index: {}]   ;;  %s1195_s6 = inlined_call_operand.vmem [shape: f32[1,160], index: 6, kind: input, shape index: {}]   ;;  %s1196_s1 = inlined_call_operand.vmem [shape: f32[8,9], index: 1, kind: input, shape index: {}]   ;;  %s1197_s2 = inlined_call_operand.<no memory space> [shape: f32[1], index: 2, kind: input, shape index: {}]   ;;  %s1198_s8 = inlined_call_operand.vmem [shape: f32[1,9], index: 8, kind: input, shape index: {}]   ;;  %s1199_s9 = inlined_call_operand.vmem [shape: f32[8,9], index: 9, kind: output, shape index: {}]  }
   0x1   :  { %v67_v0 = vld [vmem:[%s1190_s3 + $0xf8] sm:$0xff]  ;;  %v66_v1 = vld [vmem:[%s1190_s3 + $0xf0] sm:$0xff]  ;;  %v65_v2 = vld [vmem:[%s1190_s3 + $0xe8] sm:$0xff]  ;;  %279 = vmatprep.mubr.f32.mxu1 %v572_v3 }
   0x2   :  { %144 = vmatprep.subr.mxu0 %v67_v0  ;;  %v64_v4 = vld [vmem:[%s1190_s3 + $0xe0] sm:$0xff]  ;;  %v63_v5 = vld [vmem:[%s1190_s3 + $0xd8] sm:$0xff]  ;;  %v62_v6 = vld [vmem:[%s1190_s3 + $0xd0] sm:$0xff] }
   0x3   :  { %145 = vmatpush1.msra.mxu0 %v66_v1  ;;  %v61_v7 = vld [vmem:[%s1190_s3 + $0xc8] sm:$0xff]  ;;  %v60_v8 = vld [vmem:[%s1190_s3 + $0xc0] sm:$0xff]  ;;  %v59_v9 = vld [vmem:[%s1190_s3 + $0xb8] sm:$0xff] }
   0x4   :  { %146 = vmatprep.subr.mxu0 %v65_v2  ;;  %v58_v10 = vld [vmem:[%s1190_s3 + $0xb0] sm:$0xff]  ;;  %v57_v11 = vld [vmem:[%s1190_s3 + $0xa8] sm:$0xff]  ;;  %v56_v12 = vld [vmem:[%s1190_s3 + $0xa0] sm:$0xff] }
   0x5   :  { %147 = vmatpush1.msra.mxu0 %v64_v4  ;;  %v55_v13 = vld [vmem:[%s1190_s3 + $0x98] sm:$0xff]  ;;  %v54_v14 = vld [vmem:[%s1190_s3 + $0x90] sm:$0xff]  ;;  %v53_v17 = vld [vmem:[%s1190_s3 + $0x88] sm:$0xff] }
   0x6   :  { %148 = vmatprep.subr.mxu0 %v63_v5  ;;  %v131_v15 = vld [vmem:[%s1190_s3 + $0x2f8] sm:$0xff]  ;;  %v130_v16 = vld [vmem:[%s1190_s3 + $0x2f0] sm:$0xff]  ;;  %v129_v18 = vld [vmem:[%s1190_s3 + $0x2e8] sm:$0xff] }
   0x7   :  { %149 = vmatpush1.msra.mxu0 %v62_v6  ;;  %215 = vmatprep.subr.mxu1 %v131_v15  ;;  %v52_v19 = vld [vmem:[%s1190_s3 + $0x80] sm:$0xff]  ;;  %v127_v21 = vld [vmem:[%s1190_s3 + $0x2d8] sm:$0xff]  ;;  %v126_v23 = vld [vmem:[%s1190_s3 + $0x2d0] sm:$0xff] }
   0x8   :  { %150 = vmatprep.subr.mxu0 %v61_v7  ;;  %216 = vmatpush1.msra.mxu1 %v130_v16  ;;  %v128_v20 = vld [vmem:[%s1190_s3 + $0x2e0] sm:$0xff]  ;;  %v51_v22 = vld [vmem:[%s1190_s3 + $0x78] sm:$0xff]  ;;  %v50_v24 = vld [vmem:[%s1190_s3 + $0x70] sm:$0xff] }
   0x9   :  { %151 = vmatpush1.msra.mxu0 %v60_v8  ;;  %217 = vmatprep.subr.mxu1 %v129_v18  ;;  %v125_v25 = vld [vmem:[%s1190_s3 + $0x2c8] sm:$0xff]  ;;  %v124_v27 = vld [vmem:[%s1190_s3 + $0x2c0] sm:$0xff]  ;;  %v123_v29 = vld [vmem:[%s1190_s3 + $0x2b8] sm:$0xff] }
   0xa   :  { %152 = vmatprep.subr.mxu0 %v59_v9  ;;  %218 = vmatpush1.msra.mxu1 %v128_v20  ;;  %v49_v26 = vld [vmem:[%s1190_s3 + $0x68] sm:$0xff]  ;;  %v48_v28 = vld [vmem:[%s1190_s3 + $0x60] sm:$0xff]  ;;  %v47_v30 = vld [vmem:[%s1190_s3 + $0x58] sm:$0xff] }
   0xb   :  { %153 = vmatpush1.msra.mxu0 %v58_v10  ;;  %219 = vmatprep.subr.mxu1 %v127_v21  ;;  %v122_v31 = vld [vmem:[%s1190_s3 + $0x2b0] sm:$0xff]  ;;  %v121_v33 = vld [vmem:[%s1190_s3 + $0x2a8] sm:$0xff]  ;;  %v120_v35 = vld [vmem:[%s1190_s3 + $0x2a0] sm:$0xff] }
   0xc   :  { %154 = vmatprep.subr.mxu0 %v57_v11  ;;  %220 = vmatpush1.msra.mxu1 %v126_v23  ;;  %v46_v32 = vld [vmem:[%s1190_s3 + $0x50] sm:$0xff]  ;;  %v45_v34 = vld [vmem:[%s1190_s3 + $0x48] sm:$0xff]  ;;  %v44_v36 = vld [vmem:[%s1190_s3 + $0x40] sm:$0xff] }
   0xd   :  { %155 = vmatpush1.msra.mxu0 %v56_v12  ;;  %221 = vmatprep.subr.mxu1 %v125_v25  ;;  %v119_v37 = vld [vmem:[%s1190_s3 + $0x298] sm:$0xff]  ;;  %v118_v39 = vld [vmem:[%s1190_s3 + $0x290] sm:$0xff]  ;;  %v117_v41 = vld [vmem:[%s1190_s3 + $0x288] sm:$0xff] }
   0xe   :  { %156 = vmatprep.subr.mxu0 %v55_v13  ;;  %222 = vmatpush1.msra.mxu1 %v124_v27  ;;  %v43_v38 = vld [vmem:[%s1190_s3 + $0x38] sm:$0xff]  ;;  %v42_v40 = vld [vmem:[%s1190_s3 + $0x30] sm:$0xff]  ;;  %v41_v42 = vld [vmem:[%s1190_s3 + $0x28] sm:$0xff] }
   0xf   :  { %157 = vmatpush1.msra.mxu0 %v54_v14  ;;  %223 = vmatprep.subr.mxu1 %v123_v29  ;;  %v116_v43 = vld [vmem:[%s1190_s3 + $0x280] sm:$0xff]  ;;  %v115_v45 = vld [vmem:[%s1190_s3 + $0x278] sm:$0xff]  ;;  %v114_v47 = vld [vmem:[%s1190_s3 + $0x270] sm:$0xff] }
  0x10   :  { %158 = vmatprep.subr.mxu0 %v53_v17  ;;  %224 = vmatpush1.msra.mxu1 %v122_v31  ;;  %v40_v44 = vld [vmem:[%s1190_s3 + $0x20] sm:$0xff]  ;;  %v39_v46 = vld [vmem:[%s1190_s3 + $0x18] sm:$0xff]  ;;  %v38_v48 = vld [vmem:[%s1190_s3 + $0x10] sm:$0xff] }
  0x11   :  { %159 = vmatpush1.msra.mxu0 %v52_v19  ;;  %225 = vmatprep.subr.mxu1 %v121_v33  ;;  %v113_v49 = vld [vmem:[%s1190_s3 + $0x268] sm:$0xff]  ;;  %v112_v51 = vld [vmem:[%s1190_s3 + $0x260] sm:$0xff]  ;;  %v111_v53 = vld [vmem:[%s1190_s3 + $0x258] sm:$0xff] }
  0x12   :  { %160 = vmatprep.subr.mxu0 %v51_v22  ;;  %226 = vmatpush1.msra.mxu1 %v120_v35  ;;  %v37_v50 = vld [vmem:[%s1190_s3 + $0x8] sm:$0xff]  ;;  %v36_v52 = vld [vmem:[%s1190_s3] sm:$0xff]  ;;  %v99_v54 = vld [vmem:[%s1190_s3 + $0x1f8] sm:$0xff] }
  0x13   :  { %161 = vmatpush1.msra.mxu0 %v50_v24  ;;  %227 = vmatprep.subr.mxu1 %v119_v37  ;;  %v110_v55 = vld [vmem:[%s1190_s3 + $0x250] sm:$0xff]  ;;  %v109_v57 = vld [vmem:[%s1190_s3 + $0x248] sm:$0xff]  ;;  %v108_v59 = vld [vmem:[%s1190_s3 + $0x240] sm:$0xff] }
  0x14   :  { %162 = vmatprep.subr.mxu0 %v49_v26  ;;  %228 = vmatpush1.msra.mxu1 %v118_v39  ;;  %v98_v56 = vld [vmem:[%s1190_s3 + $0x1f0] sm:$0xff]  ;;  %v97_v58 = vld [vmem:[%s1190_s3 + $0x1e8] sm:$0xff]  ;;  %v96_v60 = vld [vmem:[%s1190_s3 + $0x1e0] sm:$0xff] }
  0x15   :  { %163 = vmatpush1.msra.mxu0 %v48_v28  ;;  %229 = vmatprep.subr.mxu1 %v117_v41  ;;  %v107_v61 = vld [vmem:[%s1190_s3 + $0x238] sm:$0xff]  ;;  %v106_v63 = vld [vmem:[%s1190_s3 + $0x230] sm:$0xff]  ;;  %v105_v1 = vld [vmem:[%s1190_s3 + $0x228] sm:$0xff] }
  0x16   :  { %164 = vmatprep.subr.mxu0 %v47_v30  ;;  %230 = vmatpush1.msra.mxu1 %v116_v43  ;;  %v95_v62 = vld [vmem:[%s1190_s3 + $0x1d8] sm:$0xff]  ;;  %v94_v0 = vld [vmem:[%s1190_s3 + $0x1d0] sm:$0xff]  ;;  %v93_v2 = vld [vmem:[%s1190_s3 + $0x1c8] sm:$0xff] }
  0x17   :  { %165 = vmatpush1.msra.mxu0 %v46_v32  ;;  %231 = vmatprep.subr.mxu1 %v115_v45  ;;  %v104_v4 = vld [vmem:[%s1190_s3 + $0x220] sm:$0xff]  ;;  %v103_v6 = vld [vmem:[%s1190_s3 + $0x218] sm:$0xff]  ;;  %v102_v8 = vld [vmem:[%s1190_s3 + $0x210] sm:$0xff] }
  0x18   :  { %166 = vmatprep.subr.mxu0 %v45_v34  ;;  %232 = vmatpush1.msra.mxu1 %v114_v47  ;;  %v92_v5 = vld [vmem:[%s1190_s3 + $0x1c0] sm:$0xff]  ;;  %v91_v7 = vld [vmem:[%s1190_s3 + $0x1b8] sm:$0xff]  ;;  %v90_v9 = vld [vmem:[%s1190_s3 + $0x1b0] sm:$0xff] }
  0x19   :  { %167 = vmatpush1.msra.mxu0 %v44_v36  ;;  %233 = vmatprep.subr.mxu1 %v113_v49  ;;  %v101_v10 = vld [vmem:[%s1190_s3 + $0x208] sm:$0xff]  ;;  %v88_v13 = vld [vmem:[%s1190_s3 + $0x1a0] sm:$0xff]  ;;  %v87_v15 = vld [vmem:[%s1190_s3 + $0x198] sm:$0xff] }
  0x1a   :  { %168 = vmatprep.subr.mxu0 %v43_v38  ;;  %234 = vmatpush1.msra.mxu1 %v112_v51  ;;  %v89_v11 = vld [vmem:[%s1190_s3 + $0x1a8] sm:$0xff]  ;;  %v100_v14 = vld [vmem:[%s1190_s3 + $0x200] sm:$0xff]  ;;  %v35_v16 = vld [vmem:[%s1191_s0 + $0x10] sm:$0xff] }
  0x1b   :  { %169 = vmatpush1.msra.mxu0 %v42_v40  ;;  %235 = vmatprep.subr.mxu1 %v111_v53  ;;  %v34_v12 = vld [vmem:[%s1191_s0 + $0x8] sm:$0xff]  ;;  %v86_v17 = vld [vmem:[%s1190_s3 + $0x190] sm:$0xff]  ;;  %v324_v18 = vld [vmem:[%s1192_s5 + $0xf8] sm:$0xff] }
  0x1c   :  { %170 = vmatprep.subr.mxu0 %v41_v42  ;;  %236 = vmatpush1.msra.mxu1 %v110_v55  ;;  %v85_v19 = vld [vmem:[%s1190_s3 + $0x188] sm:$0xff]  ;;  %v323_v20 = vld [vmem:[%s1192_s5 + $0xf0] sm:$0xff]  ;;  %v84_v21 = vld [vmem:[%s1190_s3 + $0x180] sm:$0xff] }
  0x1d   :  { %171 = vmatpush1.msra.mxu0 %v40_v44  ;;  %237 = vmatprep.subr.mxu1 %v109_v57  ;;  %v322_v22 = vld [vmem:[%s1192_s5 + $0xe8] sm:$0xff]  ;;  %v83_v23 = vld [vmem:[%s1190_s3 + $0x178] sm:$0xff]  ;;  %v321_v24 = vld [vmem:[%s1192_s5 + $0xe0] sm:$0xff] }
  0x1e   :  { %172 = vmatprep.subr.mxu0 %v39_v46  ;;  %238 = vmatpush1.msra.mxu1 %v108_v59  ;;  %v82_v25 = vld [vmem:[%s1190_s3 + $0x170] sm:$0xff]  ;;  %v320_v26 = vld [vmem:[%s1192_s5 + $0xd8] sm:$0xff]  ;;  %v81_v27 = vld [vmem:[%s1190_s3 + $0x168] sm:$0xff] }
  0x1f   :  { %173 = vmatpush1.msra.mxu0 %v38_v48  ;;  %239 = vmatprep.subr.mxu1 %v107_v61  ;;  %v319_v28 = vld [vmem:[%s1192_s5 + $0xd0] sm:$0xff]  ;;  %v80_v29 = vld [vmem:[%s1190_s3 + $0x160] sm:$0xff]  ;;  %v318_v30 = vld [vmem:[%s1192_s5 + $0xc8] sm:$0xff] }
  0x20   :  { %174 = vmatprep.subr.mxu0 %v37_v50  ;;  %240 = vmatpush1.msra.mxu1 %v106_v63  ;;  %v79_v31 = vld [vmem:[%s1190_s3 + $0x158] sm:$0xff]  ;;  %v317_v32 = vld [vmem:[%s1192_s5 + $0xc0] sm:$0xff]  ;;  %v78_v33 = vld [vmem:[%s1190_s3 + $0x150] sm:$0xff] }
  0x21   :  { %175 = vmatpush1.msra.mxu0 %v36_v52  ;;  %241 = vmatprep.subr.mxu1 %v105_v1  ;;  %v316_v34 = vld [vmem:[%s1192_s5 + $0xb8] sm:$0xff]  ;;  %v77_v35 = vld [vmem:[%s1190_s3 + $0x148] sm:$0xff]  ;;  %v315_v36 = vld [vmem:[%s1192_s5 + $0xb0] sm:$0xff] }
  0x22   :  { %176 = vmatprep.subr.mxu0 %v99_v54  ;;  %242 = vmatpush1.msra.mxu1 %v104_v4  ;;  %v76_v37 = vld [vmem:[%s1190_s3 + $0x140] sm:$0xff]  ;;  %v314_v38 = vld [vmem:[%s1192_s5 + $0xa8] sm:$0xff]  ;;  %v75_v39 = vld [vmem:[%s1190_s3 + $0x138] sm:$0xff] }
  0x23   :  { %177 = vmatpush2.msra.mxu0 %v98_v56  ;;  %243 = vmatprep.subr.mxu1 %v103_v6  ;;  %v313_v40 = vld [vmem:[%s1192_s5 + $0xa0] sm:$0xff]  ;;  %v74_v41 = vld [vmem:[%s1190_s3 + $0x130] sm:$0xff]  ;;  %v312_v42 = vld [vmem:[%s1192_s5 + $0x98] sm:$0xff] }
  0x24   :  { %178 = vmatprep.subr.mxu0 %v97_v58  ;;  %244 = vmatpush1.msra.mxu1 %v102_v8  ;;  %v73_v43 = vld [vmem:[%s1190_s3 + $0x128] sm:$0xff]  ;;  %v311_v44 = vld [vmem:[%s1192_s5 + $0x90] sm:$0xff]  ;;  %v72_v45 = vld [vmem:[%s1190_s3 + $0x120] sm:$0xff] }
  0x25   :  { %179 = vmatpush2.msra.mxu0 %v96_v60  ;;  %245 = vmatprep.subr.mxu1 %v101_v10  ;;  %v310_v46 = vld [vmem:[%s1192_s5 + $0x88] sm:$0xff]  ;;  %v71_v47 = vld [vmem:[%s1190_s3 + $0x118] sm:$0xff]  ;;  %v309_v48 = vld [vmem:[%s1192_s5 + $0x80] sm:$0xff] }
  0x26   :  { %180 = vmatprep.subr.mxu0 %v95_v62  ;;  %208 = vmatprep.mubr.f32.mxu0 %v34_v12  ;;  %v70_v49 = vld [vmem:[%s1190_s3 + $0x110] sm:$0xff]  ;;  %v308_v50 = vld [vmem:[%s1192_s5 + $0x78] sm:$0xff]  ;;  %v69_v51 = vld [vmem:[%s1190_s3 + $0x108] sm:$0xff] }
  0x27   :  { %181 = vmatpush2.msra.mxu0 %v94_v0  ;;  %246 = vmatpush1.msra.mxu1 %v100_v14  ;;  %v307_v52 = vld [vmem:[%s1192_s5 + $0x70] sm:$0xff]  ;;  %v68_v53 = vld [vmem:[%s1190_s3 + $0x100] sm:$0xff]  ;;  %v306_v54 = vld [vmem:[%s1192_s5 + $0x68] sm:$0xff] }
  0x28   :  { %182 = vmatprep.subr.mxu0 %v93_v2  ;;  %280 = vmatmul.mubr.f32.vlgmr.msra.gmra.mxu1 %v35_v16  ;;  %v33_v55 = vld [vmem:[%s1191_s0] sm:$0xff]  ;;  %v304_v57 = vld [vmem:[%s1192_s5 + $0x58] sm:$0xff]  ;;  %v303_v58 = vld [vmem:[%s1192_s5 + $0x50] sm:$0xff] }
  0x29   :  { %183 = vmatpush2.msra.mxu0 %v92_v5  ;;  %364 = vmatprep.subr.mxu1 %v324_v18  ;;  %v305_v56 = vld [vmem:[%s1192_s5 + $0x60] sm:$0xff]  ;;  %v302_v59 = vld [vmem:[%s1192_s5 + $0x48] sm:$0xff]  ;;  %v300_v61 = vld [vmem:[%s1192_s5 + $0x38] sm:$0xff] }
  0x2a   :  { %184 = vmatprep.subr.mxu0 %v91_v7  ;;  %365 = vmatpush1.msra.mxu1 %v323_v20  ;;  %v301_v60 = vld [vmem:[%s1192_s5 + $0x40] sm:$0xff]  ;;  %v299_v62 = vld [vmem:[%s1192_s5 + $0x30] sm:$0xff]  ;;  %v298_v63 = vld [vmem:[%s1192_s5 + $0x28] sm:$0xff] }
  0x2b   :  { %185 = vmatpush2.msra.mxu0 %v90_v9  ;;  %366 = vmatprep.subr.mxu1 %v322_v22  ;;  %v297_v0 = vld [vmem:[%s1192_s5 + $0x20] sm:$0xff]  ;;  %v296_v1 = vld [vmem:[%s1192_s5 + $0x18] sm:$0xff]  ;;  %v295_v2 = vld [vmem:[%s1192_s5 + $0x10] sm:$0xff] }
  0x2c   :  { %186 = vmatprep.subr.mxu0 %v89_v11  ;;  %367 = vmatpush1.msra.mxu1 %v321_v24  ;;  %v294_v4 = vld [vmem:[%s1192_s5 + $0x8] sm:$0xff]  ;;  %v293_v5 = vld [vmem:[%s1192_s5] sm:$0xff]  ;;  %v348_v6 = vld [vmem:[%s1192_s5 + $0x1b8] sm:$0xff] }
  0x2d   :  { %187 = vmatpush2.msra.mxu0 %v88_v13  ;;  %368 = vmatprep.subr.mxu1 %v320_v26  ;;  %v347_v7 = vld [vmem:[%s1192_s5 + $0x1b0] sm:$0xff]  ;;  %v346_v8 = vld [vmem:[%s1192_s5 + $0x1a8] sm:$0xff]  ;;  %v345_v9 = vld [vmem:[%s1192_s5 + $0x1a0] sm:$0xff] }
  0x2e   :  { %188 = vmatprep.subr.mxu0 %v87_v15  ;;  %369 = vmatpush1.msra.mxu1 %v319_v28  ;;  %v344_v10 = vld [vmem:[%s1192_s5 + $0x198] sm:$0xff]  ;;  %v343_v11 = vld [vmem:[%s1192_s5 + $0x190] sm:$0xff]  ;;  %v342_v12 = vld [vmem:[%s1192_s5 + $0x188] sm:$0xff] }
  0x2f   :  { %189 = vmatpush2.msra.mxu0 %v86_v17  ;;  %370 = vmatprep.subr.mxu1 %v318_v30  ;;  %v341_v13 = vld [vmem:[%s1192_s5 + $0x180] sm:$0xff]  ;;  %v340_v14 = vld [vmem:[%s1192_s5 + $0x178] sm:$0xff]  ;;  %v339_v15 = vld [vmem:[%s1192_s5 + $0x170] sm:$0xff] }
  0x30   :  { %190 = vmatprep.subr.mxu0 %v85_v19  ;;  %371 = vmatpush1.msra.mxu1 %v317_v32  ;;  %v338_v16 = vld [vmem:[%s1192_s5 + $0x168] sm:$0xff]  ;;  %v337_v17 = vld [vmem:[%s1192_s5 + $0x160] sm:$0xff]  ;;  %v336_v18 = vld [vmem:[%s1192_s5 + $0x158] sm:$0xff] }
  0x31   :  { %191 = vmatpush2.msra.mxu0 %v84_v21  ;;  %372 = vmatprep.subr.mxu1 %v316_v34  ;;  %v335_v19 = vld [vmem:[%s1192_s5 + $0x150] sm:$0xff]  ;;  %v334_v20 = vld [vmem:[%s1192_s5 + $0x148] sm:$0xff]  ;;  %v333_v21 = vld [vmem:[%s1192_s5 + $0x140] sm:$0xff] }
  0x32   :  { %192 = vmatprep.subr.mxu0 %v83_v23  ;;  %373 = vmatpush1.msra.mxu1 %v315_v36  ;;  %v332_v22 = vld [vmem:[%s1192_s5 + $0x138] sm:$0xff]  ;;  %v331_v23 = vld [vmem:[%s1192_s5 + $0x130] sm:$0xff]  ;;  %v330_v24 = vld [vmem:[%s1192_s5 + $0x128] sm:$0xff] }
  0x33   :  { %193 = vmatpush2.msra.mxu0 %v82_v25  ;;  %374 = vmatprep.subr.mxu1 %v314_v38  ;;  %v329_v25 = vld [vmem:[%s1192_s5 + $0x120] sm:$0xff]  ;;  %v328_v26 = vld [vmem:[%s1192_s5 + $0x118] sm:$0xff]  ;;  %v326_v28 = vld [vmem:[%s1192_s5 + $0x108] sm:$0xff] }
  0x34   :  { %194 = vmatprep.subr.mxu0 %v81_v27  ;;  %375 = vmatpush1.msra.mxu1 %v313_v40  ;;  %v327_v27 = vld [vmem:[%s1192_s5 + $0x110] sm:$0xff]  ;;  %v457_v30 = vld [vmem:[%s1193_s7 + $0x78] sm:$0xff]  ;;  %v455_v32 = vld [vmem:[%s1193_s7 + $0x68] sm:$0xff] }
  0x35   :  { %195 = vmatpush2.msra.mxu0 %v80_v29  ;;  %376 = vmatprep.subr.mxu1 %v312_v42  ;;  %v325_v29 = vld [vmem:[%s1192_s5 + $0x100] sm:$0xff]  ;;  %v453_v34 = vld [vmem:[%s1193_s7 + $0x58] sm:$0xff]  ;;  %v451_v36 = vld [vmem:[%s1193_s7 + $0x48] sm:$0xff]  ;;  %v134_v42 = vlaneseq }
  0x36   :  { %196 = vmatprep.subr.mxu0 %v79_v31  ;;  %377 = vmatpush1.msra.mxu1 %v311_v44  ;;  %v456_v31 = vld [vmem:[%s1193_s7 + $0x70] sm:$0xff]  ;;  %v449_v38 = vld [vmem:[%s1193_s7 + $0x38] sm:$0xff]  ;;  %v447_v40 = vld [vmem:[%s1193_s7 + $0x28] sm:$0xff] }
  0x37   :  { %197 = vmatpush2.msra.mxu0 %v78_v33  ;;  %378 = vmatprep.subr.mxu1 %v310_v46  ;;  %v454_v33 = vld [vmem:[%s1193_s7 + $0x60] sm:$0xff] }
  0x38   :  { %198 = vmatprep.subr.mxu0 %v77_v35  ;;  %379 = vmatpush1.msra.mxu1 %v309_v48  ;;  %v452_v35 = vld [vmem:[%s1193_s7 + $0x50] sm:$0xff] }
  0x39   :  { %199 = vmatpush2.msra.mxu0 %v76_v37  ;;  %380 = vmatprep.subr.mxu1 %v308_v50  ;;  %v450_v37 = vld [vmem:[%s1193_s7 + $0x40] sm:$0xff] }
  0x3a   :  { %200 = vmatprep.subr.mxu0 %v75_v39  ;;  %381 = vmatpush1.msra.mxu1 %v307_v52  ;;  %v448_v39 = vld [vmem:[%s1193_s7 + $0x30] sm:$0xff] }
  0x3b   :  { %201 = vmatpush2.msra.mxu0 %v74_v41  ;;  %382 = vmatprep.subr.mxu1 %v306_v54  ;;  %v446_v41 = vld [vmem:[%s1193_s7 + $0x20] sm:$0xff] }
  0x3c   :  { %202 = vmatprep.subr.mxu0 %v73_v43  ;;  %383 = vmatpush1.msra.mxu1 %v305_v56  ;;  %v135_v43 = vshrl.u32 %v134_v42, 7 }
  0x3d   :  { %203 = vmatpush2.msra.mxu0 %v72_v45  ;;  %384 = vmatprep.subr.mxu1 %v304_v57  ;;  %v132_v45 = vld [vmem:[%s1194_s4] sm:$0x3] }
  0x3e   :  { %204 = vmatprep.subr.mxu0 %v71_v47  ;;  %385 = vmatpush1.msra.mxu1 %v303_v58  ;;  %v136_v44 = vsub.s32 0, %v135_v43  ;;  %v140_v46 = vsub.s32 1, %v135_v43 }
  0x3f   :  { %205 = vmatpush2.msra.mxu0 %v70_v49  ;;  %386 = vmatprep.subr.mxu1 %v302_v59 }
  0x40   :  { %206 = vmatprep.subr.mxu0 %v69_v51  ;;  %387 = vmatpush1.msra.mxu1 %v301_v60  ;;  %v137_v47 = vrot.slane %v132_v45, %v136_v44  ;;  %v141_v48 = vrot.slane %v132_v45, %v140_v46  ;;  %v445_v60 = vld [vmem:[%s1193_s7 + $0x18] sm:$0xff] }
  0x41   :  { %207 = vmatpush2.msra.mxu0 %v68_v53  ;;  %388 = vmatprep.subr.mxu1 %v300_v61  ;;  %v444_v61 = vld [vmem:[%s1193_s7 + $0x10] sm:$0xff] }
  0x42   :  { %209 = vmatmul.mubr.f32.vlgmr.msra.gmra.mxu0 %v33_v55  ;;  %469 = vmatprep.subr.mxu0 %v572_v3 }
  0x43   :  { %389 = vmatpush1.msra.mxu1 %v299_v62  ;;  %470 = vmatpush1.msra.mxu0 %v457_v30  ;;  %v443_v62 = vld [vmem:[%s1193_s7 + $0x8] sm:$0xff] }
  0x44   :  { %390 = vmatprep.subr.mxu1 %v298_v63  ;;  %471 = vmatprep.subr.mxu0 %v572_v3  ;;  %v442_v63 = vld [vmem:[%s1193_s7] sm:$0xff] }
  0x45   :  { %391 = vmatpush1.msra.mxu1 %v297_v0  ;;  %472 = vmatpush1.msra.mxu0 %v456_v31  ;;  %v461_v0 = vld [vmem:[%s1193_s7 + $0x98] sm:$0xff] }
  0x46   :  { %392 = vmatprep.subr.mxu1 %v296_v1  ;;  %473 = vmatprep.subr.mxu0 %v572_v3  ;;  %v460_v1 = vld [vmem:[%s1193_s7 + $0x90] sm:$0xff] }
  0x47   :  { %393 = vmatpush1.msra.mxu1 %v295_v2  ;;  %474 = vmatpush1.msra.mxu0 %v455_v32  ;;  %v459_v2 = vld [vmem:[%s1193_s7 + $0x88] sm:$0xff] }
  0x48   :  { %394 = vmatprep.subr.mxu1 %v294_v4  ;;  %475 = vmatprep.subr.mxu0 %v572_v3  ;;  %v458_v4 = vld [vmem:[%s1193_s7 + $0x80] sm:$0xff] }
  0x49   :  { %395 = vmatpush1.msra.mxu1 %v293_v5  ;;  %476 = vmatpush1.msra.mxu0 %v454_v33  ;;  %v349_v5 = vld [vmem:[%s1195_s6] sm:$0x3] }
  0x4a   :  { %404 = vmatprep.subr.mxu1 %v348_v6  ;;  %477 = vmatprep.subr.mxu0 %v572_v3  ;;  %v354_v6 = vrot.slane %v349_v5, %v136_v44 }
  0x4b   :  { %405 = vmatpush2.msra.mxu1 %v347_v7  ;;  %478 = vmatpush1.msra.mxu0 %v453_v34  ;;  %v358_v7 = vrot.slane %v349_v5, %v140_v46 }
  0x4c   :  { %406 = vmatprep.subr.mxu1 %v346_v8  ;;  %479 = vmatprep.subr.mxu0 %v572_v3 }
  0x4d   :  { %407 = vmatpush2.msra.mxu1 %v345_v9  ;;  %480 = vmatpush1.msra.mxu0 %v452_v35 }
  0x4e   :  { %408 = vmatprep.subr.mxu1 %v344_v10  ;;  %481 = vmatprep.subr.mxu0 %v572_v3 }
  0x4f   :  { %409 = vmatpush2.msra.mxu1 %v343_v11  ;;  %482 = vmatpush1.msra.mxu0 %v451_v36 }
  0x50   :  { %410 = vmatprep.subr.mxu1 %v342_v12  ;;  %483 = vmatprep.subr.mxu0 %v572_v3 }
  0x51   :  { %411 = vmatpush2.msra.mxu1 %v341_v13  ;;  %484 = vmatpush1.msra.mxu0 %v450_v37 }
  0x52   :  { %412 = vmatprep.subr.mxu1 %v340_v14  ;;  %485 = vmatprep.subr.mxu0 %v572_v3 }
  0x53   :  { %413 = vmatpush2.msra.mxu1 %v339_v15  ;;  %486 = vmatpush1.msra.mxu0 %v449_v38  ;;  %v464_v15 = vstv %s1197_s2 }
  0x54   :  { %414 = vmatprep.subr.mxu1 %v338_v16  ;;  %487 = vmatprep.subr.mxu0 %v572_v3 }
  0x55   :  { %415 = vmatpush2.msra.mxu1 %v337_v17  ;;  %488 = vmatpush1.msra.mxu0 %v448_v39 }
  0x56   :  { %416 = vmatprep.subr.mxu1 %v336_v18  ;;  %489 = vmatprep.subr.mxu0 %v572_v3  ;;  %v566_v18 = vld [vmem:[%s1198_s8] ss:$0 sm:$0xff] }
  0x57   :  { %417 = vmatpush2.msra.mxu1 %v335_v19  ;;  %490 = vmatpush1.msra.mxu0 %v447_v40 }
  0x58   :  { %418 = vmatprep.subr.mxu1 %v334_v20  ;;  %491 = vmatprep.subr.mxu0 %v572_v3 }
  0x59   :  { %419 = vmatpush2.msra.mxu1 %v333_v21  ;;  %492 = vmatpush1.msra.mxu0 %v446_v41 }
  0x5a   :  { %420 = vmatprep.subr.mxu1 %v332_v22  ;;  %493 = vmatprep.subr.mxu0 %v572_v3 }
  0x5b   :  { %421 = vmatpush2.msra.mxu1 %v331_v23  ;;  %494 = vmatpush1.msra.mxu0 %v445_v60 }
  0x5c   :  { %422 = vmatprep.subr.mxu1 %v330_v24  ;;  %495 = vmatprep.subr.mxu0 %v572_v3 }
  0x5d   :  { %423 = vmatpush2.msra.mxu1 %v329_v25  ;;  %496 = vmatpush1.msra.mxu0 %v444_v61 }
  0x5e   :  { %424 = vmatprep.subr.mxu1 %v328_v26  ;;  %497 = vmatprep.subr.mxu0 %v572_v3 }
  0x5f   :  { %425 = vmatpush2.msra.mxu1 %v327_v27  ;;  %498 = vmatpush1.msra.mxu0 %v443_v62 }
  0x60   :  { %426 = vmatprep.subr.mxu1 %v326_v28  ;;  %499 = vmatprep.subr.mxu0 %v572_v3 }
  0x61   :  { %427 = vmatpush2.msra.mxu1 %v325_v29  ;;  %500 = vmatpush1.msra.mxu0 %v442_v63 }
  0x62   :  { %525 = vmatprep.subr.mxu0 %v572_v3 }
  0x63   :  { %526 = vmatpush2.msra.mxu0 %v461_v0 }
  0x64   :  { %527 = vmatprep.subr.mxu0 %v572_v3 }
  0x65   :  { %528 = vmatpush2.msra.mxu0 %v460_v1 }
  0x66   :  { %529 = vmatprep.subr.mxu0 %v572_v3 }
  0x67   :  { %530 = vmatpush2.msra.mxu0 %v459_v2 }
  0x68   :  { %531 = vmatprep.subr.mxu0 %v572_v3  ;;  %v462_v3 = vld [vmem:[%s1196_s1] sm:$0xff] }
  0x69   :  { %532 = vmatpush2.msra.mxu0 %v458_v4  ;;  %v465_v16 = vmul.f32 %v464_v15, %v462_v3 }
  0xe8   :  { %v281_v50 = vpop.f32.mrf.mxu1 }
  0xea   :  { %v283_v55 = vpop.f32.mrf.mxu1 }
 0x102   :  { %v210_v49 = vpop.f32.mrf.mxu0 }
 0x103   :  { %v211_v51 = vadd.f32 %v210_v49, %v137_v47 }
 0x104   :  { %v212_v52 = vpop.f32.mrf.mxu0 }
 0x105   :  { %v282_v53 = vadd.f32 %v281_v50, %v211_v51  ;;  %v213_v54 = vadd.f32 %v212_v52, %v141_v48 }
 0x107   :  { %v286_v56 = vmax.f32 %v282_v53, 0.0  ;;  %v284_v57 = vadd.f32 %v283_v55, %v213_v54 }
 0x109   :  { %v287_v58 = vmax.f32 %v284_v57, 0.0 }
 0x10b   :  { %290 = vst.msk [vmem:[#allocation2 + $0x8] sm:$0xff] %vm289_vm0, %v287_v58 }
 0x112   :  { %v292_v59 = vld [vmem:[#allocation2 + $0x8] sm:$0xff] }
 0x113   :  { %564 = vmatprep.mubr.msk.f32.mxu1 %vm289_vm0, %v292_v59 }
 0x114   :  { %429 = vmatmul.mubr.f32.vlgmr.msra.gmra.mxu1 %v286_v56 }
 0x1d4   :  { %v430_v8 = vpop.f32.mrf.mxu1 }
 0x1d5   :  { %v431_v9 = vadd.f32 %v430_v8, %v354_v6 }
 0x1d6   :  { %v432_v10 = vpop.f32.mrf.mxu1 }
 0x1d7   :  { %v435_v11 = vmax.f32 %v431_v9, 0.0  ;;  %v433_v12 = vadd.f32 %v432_v10, %v358_v7 }
 0x1d9   :  { %v436_v13 = vmax.f32 %v433_v12, 0.0 }
 0x1db   :  { %439 = vst.msk [vmem:[#allocation3 + $0x8] sm:$0xff] %vm438_vm1, %v436_v13 }
 0x1e2   :  { %v441_v14 = vld [vmem:[#allocation3 + $0x8] sm:$0xff] }
 0x1e3   :  { %565 = vmatprep.mubr.msk.f32.mxu0 %vm438_vm1, %v441_v14 }
 0x1e4   :  { %534 = vmatmul.mubr.f32.vlgmr.msra.gmra.mxu0 %v435_v11 }
 0x2a4   :  { %v535_v17 = vpop.f32.mrf.mxu0 }
 0x2a5   :  { %v536_v19 = vadd.f32 %v535_v17, %v465_v16 }
 0x2a6   :  { %v537_v20 = vpop.f32.mrf.mxu0 }
 0x2a7   :  { %v546_v21 = vadd.f32 %v566_v18, %v536_v19 }
 0x2a9   :  { %v548_v22 = vsel %vm547_vm2, %v546_v21, -inf }
 0x2aa   :  { %549 = vmax.xlane.f32.xlu0 %v548_v22 }
 0x333   :  { %v550_v23 = vpop.xlane.xlu0 %549 }
 0x334   :  { %v551_v24 = vsub.f32 %v546_v21, %v550_v23 }
 0x336   :  { %v552_v25 = vmul.f32 1.442695, %v551_v24 }
 0x338   :  { %568 = vpow2.f32 %v552_v25 }
 0x345   :  { %v569_v26 = vpop.eup %568 }
 0x346   :  { %v554_v27 = vsel %vm547_vm2, %v569_v26, 0.0 }
 0x347   :  { %555 = vadd.xlane.f32.xlu0 %v554_v27 }
 0x3d0   :  { %v556_v28 = vpop.xlane.xlu0 %555 }
 0x3d1   :  { %570 = vrcp.f32 %v556_v28 }
 0x3de   :  { %v571_v29 = vpop.eup %570 }
 0x3df   :  { %v558_v30 = vmul.f32 %v571_v29, %v569_v26 }
 0x3e1   :  { %559 = vst.msk [vmem:[%s1199_s9] sm:$0xff] %vm547_vm2, %v558_v30 }

</bundles_post_ra>
